<compile_context>
chip_gen: v5e
topology: v5e:2x2
jax: 0.10.0
libtpu: 0.0.40
codegen_flags: <defaults>
</compile_context>

<pallas_src>
import jax
import jax.numpy as jnp
from jax.experimental import pallas as pl
from jax.experimental.pallas import tpu as pltpu


def _cross_en_kernel(logits_ref, target_ref, out_ref):
    x = logits_ref[...].astype(jnp.float32)            # (T, C)
    t = target_ref[...].astype(jnp.float32)            # (T, C)

    # Numerically stable logsumexp along classes (last dim -> lanes).
    m = jnp.max(x, axis=-1, keepdims=True)              # (T, 1)
    z = x - m                                            # (T, C)
    s = jnp.sum(jnp.exp(z), axis=-1, keepdims=True)      # single exp pass
    lse = jnp.log(s)                                     # (T, 1)

    # Fused soft-target CE:  -sum_j t * logp  ==  lse * sum(t) - sum(t * z)
    t_sum = jnp.sum(t, axis=-1, keepdims=True)           # (T, 1)
    t_z = jnp.sum(t * z, axis=-1, keepdims=True)         # (T, 1)
    partial = jnp.sum(lse * t_sum - t_z)                 # scalar tile sum

    # Lane-dense partial-sum slab; wrapper reads [0, 0] of each tile's slab.
    out_ref[...] = jnp.full(out_ref.shape, partial, dtype=jnp.float32)


def _round_up(x, m):
    return ((x + m - 1) // m) * m


def cross_en(v2g_sim_matrix, l2g_sim_matrix, *, target_tile_rows=512,
             vmem_input_budget_bytes=16 * 1024 * 1024):
    assert v2g_sim_matrix.shape == l2g_sim_matrix.shape
    assert v2g_sim_matrix.ndim == 2
    n, c = v2g_sim_matrix.shape

    in_bytes = (jnp.dtype(v2g_sim_matrix.dtype).itemsize
                + jnp.dtype(l2g_sim_matrix.dtype).itemsize)

    # Rows whose input double-buffers fit the budget, rounded down to 8.
    fit_rows = max(8, (vmem_input_budget_bytes // (2 * in_bytes * c)) // 8 * 8)
    tile_rows = min(target_tile_rows, fit_rows, _round_up(n, 8))
    tile_rows = max(8, tile_rows // 8 * 8)

    n_padded = _round_up(n, tile_rows)
    num_tiles = n_padded // tile_rows
    if n_padded != n:
        pad = n_padded - n
        # Zero target rows contribute exactly 0 to the fused per-row loss.
        v2g_sim_matrix = jnp.pad(v2g_sim_matrix, ((0, pad), (0, 0)))
        l2g_sim_matrix = jnp.pad(l2g_sim_matrix, ((0, pad), (0, 0)))

    # TODO(synk): for very large C (> ~16K) add a class-tile grid axis with an
    # online (flash-style) logsumexp accumulator; full-C blocks suffice below.

    buf_bytes = 2 * tile_rows * c * in_bytes + 2 * 8 * 128 * 4
    vmem_limit = int(min(48 * 1024 * 1024, max(4 * 1024 * 1024, 2 * buf_bytes)))

    out_bytes = num_tiles * 8 * 128 * 4
    cost = pl.CostEstimate(
        flops=5 * n_padded * c,
        transcendentals=n_padded * c,
        bytes_accessed=n_padded * c * in_bytes + out_bytes,
    )

    partials = pl.pallas_call(
        _cross_en_kernel,
        out_shape=jax.ShapeDtypeStruct((num_tiles, 8, 128), jnp.float32),
        grid=(num_tiles,),
        in_specs=[
            pl.BlockSpec((tile_rows, c), lambda i: (i, 0)),
            pl.BlockSpec((tile_rows, c), lambda i: (i, 0)),
        ],
        out_specs=pl.BlockSpec((1, 8, 128), lambda i: (i, 0, 0)),
        compiler_params=pltpu.CompilerParams(
            dimension_semantics=("parallel",),
            vmem_limit_bytes=vmem_limit,
        ),
        cost_estimate=cost,
    )(v2g_sim_matrix, l2g_sim_matrix)

    # Tiny final reduction + PyTorch 'mean' normalization (by original N).
    return jnp.sum(partials[:, 0, 0]) / jnp.float32(n)


def _reference(v2g, l2g):
    logp = jax.nn.log_softmax(v2g.astype(jnp.float32), axis=-1)
    return jnp.mean(-jnp.sum(l2g.astype(jnp.float32) * logp, axis=-1))


if __name__ == "__main__":
    key = jax.random.PRNGKey(0)
    k1, k2, k3, k4, k5, k6 = jax.random.split(key, 6)

    # Case 1: small CLIP4Clip-style sim matrix, single tile.
    N, C = 8, 32
    v2g = jax.random.normal(k1, (N, C), dtype=jnp.float32)
    l2g = jax.nn.softmax(jax.random.normal(k2, (N, C), dtype=jnp.float32), -1)
    out = cross_en(v2g, l2g)
    jax.block_until_ready(out)
    ref = _reference(v2g, l2g)
    assert jnp.allclose(out, ref, atol=1e-5, rtol=1e-5), (out, ref)

    # Case 2: multi-tile grid + row padding (N not a multiple of the tile).
    N2, C2 = 13, 32
    v2g2 = jax.random.normal(k3, (N2, C2), dtype=jnp.float32)
    l2g2 = jax.nn.softmax(jax.random.normal(k4, (N2, C2), dtype=jnp.float32), -1)
    out2 = cross_en(v2g2, l2g2, target_tile_rows=8)
    jax.block_until_ready(out2)
    ref2 = _reference(v2g2, l2g2)
    assert jnp.allclose(out2, ref2, atol=1e-5, rtol=1e-5), (out2, ref2)

    # Case 3: bf16 inputs stay bf16 on the HBM path, cast in-kernel.
    v2g3 = jax.random.normal(k5, (N, C), dtype=jnp.float32).astype(jnp.bfloat16)
    l2g3 = jax.nn.softmax(
        jax.random.normal(k6, (N, C), dtype=jnp.float32), -1).astype(jnp.bfloat16)
    out3 = cross_en(v2g3, l2g3)
    jax.block_until_ready(out3)
    ref3 = _reference(v2g3, l2g3)
    assert jnp.allclose(out3, ref3, atol=1e-4, rtol=1e-4), (out3, ref3)

    print("KERNEL_OK")
</pallas_src>

<mosaic_0001>
module attributes {stable_mosaic.version = 11 : i64} {
  func.func @_cross_en_kernel(%arg0: i32, %arg1: memref<8x32xf32, #tpu.memory_space<vmem>>, %arg2: memref<8x32xf32, #tpu.memory_space<vmem>>, %arg3: memref<1x8x128xf32, #tpu.memory_space<vmem>>) attributes {dimension_semantics = [#tpu.dimension_semantics<parallel>], iteration_bounds = array<i64: 1>, scalar_prefetch = 0 : i64, scratch_operands = 0 : i64, tpu.core_type = #tpu.core_type<tc>, window_params = [{transform_indices = @transform_0, window_bounds = array<i64: 8, 32>}, {transform_indices = @transform_1, window_bounds = array<i64: 8, 32>}, {transform_indices = @transform_2, window_bounds = array<i64: 1, 8, 128>}]} {
    %c0 = arith.constant 0 : index
    %c0_0 = arith.constant 0 : index
    %0 = vector.load %arg1[%c0, %c0_0] : memref<8x32xf32, #tpu.memory_space<vmem>>, vector<8x32xf32>
    %c0_1 = arith.constant 0 : index
    %c0_2 = arith.constant 0 : index
    %1 = vector.load %arg2[%c0_1, %c0_2] : memref<8x32xf32, #tpu.memory_space<vmem>>, vector<8x32xf32>
    %cst = arith.constant dense<0xFF800000> : vector<8xf32>
    %2 = vector.multi_reduction <maximumf>, %0, %cst [1] : vector<8x32xf32> to vector<8xf32>
    %3 = vector.shape_cast %2 : vector<8xf32> to vector<8x1xf32>
    %4 = vector.broadcast %3 : vector<8x1xf32> to vector<8x32xf32>
    %5 = arith.subf %0, %4 : vector<8x32xf32>
    %6 = math.exp %5 : vector<8x32xf32>
    %cst_3 = arith.constant dense<0.000000e+00> : vector<8xf32>
    %7 = vector.multi_reduction <add>, %6, %cst_3 [1] : vector<8x32xf32> to vector<8xf32>
    %8 = vector.shape_cast %7 : vector<8xf32> to vector<8x1xf32>
    %9 = math.log %8 : vector<8x1xf32>
    %cst_4 = arith.constant dense<0.000000e+00> : vector<8xf32>
    %10 = vector.multi_reduction <add>, %1, %cst_4 [1] : vector<8x32xf32> to vector<8xf32>
    %11 = vector.shape_cast %10 : vector<8xf32> to vector<8x1xf32>
    %12 = arith.mulf %1, %5 : vector<8x32xf32>
    %cst_5 = arith.constant dense<0.000000e+00> : vector<8xf32>
    %13 = vector.multi_reduction <add>, %12, %cst_5 [1] : vector<8x32xf32> to vector<8xf32>
    %14 = vector.shape_cast %13 : vector<8xf32> to vector<8x1xf32>
    %15 = arith.mulf %9, %11 : vector<8x1xf32>
    %16 = arith.subf %15, %14 : vector<8x1xf32>
    %17 = vector.shape_cast %16 : vector<8x1xf32> to vector<1x8x1xf32>
    %cst_6 = arith.constant dense<0.000000e+00> : vector<1xf32>
    %18 = vector.multi_reduction <add>, %17, %cst_6 [1, 2] : vector<1x8x1xf32> to vector<1xf32>
    %19 = vector.shape_cast %18 : vector<1xf32> to vector<1x1x1xf32>
    %20 = vector.extract %19[0, 0, 0] : f32 from vector<1x1x1xf32>
    %21 = vector.broadcast %20 : f32 to vector<1x8x128xf32>
    %c0_7 = arith.constant 0 : index
    %c0_8 = arith.constant 0 : index
    %c0_9 = arith.constant 0 : index
    %22 = vector.load %arg3[%c0_7, %c0_8, %c0_9] : memref<1x8x128xf32, #tpu.memory_space<vmem>>, vector<1x8x128xf32>
    tpu.vector_store %arg3[%c0_7, %c0_8, %c0_9], %21 {strides = array<i32>} : memref<1x8x128xf32, #tpu.memory_space<vmem>>, vector<1x8x128xf32>,
    return
  }
  func.func @transform_0(%arg0: i32) -> (i32, i32) {
    %c0_i32 = arith.constant 0 : i32
    %c0_i32_0 = arith.constant 0 : i32
    return %arg0, %c0_i32 : i32, i32
  }
  func.func @transform_1(%arg0: i32) -> (i32, i32) {
    %c0_i32 = arith.constant 0 : i32
    %c0_i32_0 = arith.constant 0 : i32
    return %arg0, %c0_i32 : i32, i32
  }
  func.func @transform_2(%arg0: i32) -> (i32, i32, i32) {
    %c0_i32 = arith.constant 0 : i32
    %c0_i32_0 = arith.constant 0 : i32
    %c0_i32_1 = arith.constant 0 : i32
    return %arg0, %c0_i32, %c0_i32_0 : i32, i32, i32
  }
}

</mosaic_0001>

<bundles_post_ra>
// kernel: tpu_custom_call.1
= control target key start
LH: loop header
LB: loop body
LE: loop exit
PB: predicated region body
PF: predicated region fallthrough
CT: control target
= control target key end

     0   :  { %7 = vsyncpa [#allocation3], 0  ;;  %s208_s0 = inlined_call_operand.hbm [shape: f32[8,32], index: 0, kind: input, shape index: {}]   ;;  %s209_s1 = inlined_call_operand.hbm [shape: f32[8,32], index: 1, kind: input, shape index: {}]   ;;  %s210_s2 = inlined_call_operand.hbm [shape: f32[1,8,128], index: 2, kind: output, shape index: {}]  }
   0x1   :  { %8 = vsyncpa [#allocation6], 0 }
   0x2   :  { %9 = vsyncpa [#allocation4], 0  ;;  %s15_s11 = sshll.u32 %s208_s0, 4  ;;  %s181_s12 = smov [#allocation2]   ;;  %s16_s11 = int_to_ptr.hbm [resolvable:$true] %s15_s11 }
   0x3   :  { %s17_s13 = sshll.u32 %s181_s12, 4  ;;  %s26_s16 = sshll.u32 %s209_s1, 4  ;;  %s18_s13 = int_to_ptr.vmem [resolvable:$true] %s17_s13  ;;  %s27_s16 = int_to_ptr.hbm [resolvable:$true] %s26_s16 }
   0x4   :  { %20 = dma.hbm_to_vmem [thread:$0]  %s16_s11, 128, %s18_s13, [#allocation3]  }
   0x5   :  { %s182_s17 = smov [#allocation5]  }
   0x6   :  { %s28_s18 = sshll.u32 %s182_s17, 4  ;;  %s29_s18 = int_to_ptr.vmem [resolvable:$true] %s28_s18 }
   0x7   :  { %31 = dma.hbm_to_vmem [thread:$0]  %s27_s16, 128, %s29_s18, [#allocation6]  }
   0x8   :  { %175 = dma.done.wait [#allocation3], 128  }
   0x9   :  { %176 = vsyncadd [#allocation3], 4294967168 }
   0xa   :  { %177 = dma.done.wait [#allocation6], 128  }
   0xb   :  { %178 = vsyncadd [#allocation6], 4294967168  ;;  %vm42_vm0 = vcmask 261120   ;;  %v40_v0 = vld [vmem:[#allocation2] sm:$0xff]  ;;  %v41_v1 = vld [vmem:[#allocation5] sm:$0xff]  ;;  %vm63_vm1 = vcmask 7168  }
   0xc   :  { %v43_v2 = vsel %vm42_vm0, %v40_v0, -inf  ;;  %v54_v3 = vsel %vm42_vm0, %v41_v1, 0.0  ;;  %s183_s0 = smov [#allocation7]   ;;  %s83_s21 = sshll.u32 %s210_s2, 4  ;;  %s84_s21 = int_to_ptr.hbm [resolvable:$true] %s83_s21 }
   0xd   :  { %44 = vmax.xlane.f32.xlu0 %v43_v2  ;;  %55 = vadd.xlane.f32.xlu1 %v54_v3  ;;  %s81_s1 = sshll.u32 %s183_s0, 4  ;;  %s82_s1 = int_to_ptr.vmem [resolvable:$true] %s81_s1 }
  0x80   :  { %v45_v4 = vpop.xlane.xlu0 %44  ;;  %v56_v12 = vpop.xlane.xlu1 %55 }
  0x81   :  { %v46_v5 = vsub.f32 %v40_v0, %v45_v4 }
  0x83   :  { %v47_v6 = vmul.f32 1.442695, %v46_v5  ;;  %v57_v7 = vmul.f32 %v46_v5, %v41_v1 }
  0x85   :  { %99 = vpow2.f32 %v47_v6  ;;  %v58_v8 = vsel %vm42_vm0, %v57_v7, 0.0 }
  0x86   :  { %59 = vadd.xlane.f32.xlu1 %v58_v8 }
  0x8b   :  { %v100_v9 = vpop.eup %99 }
  0x8c   :  { %v49_v10 = vsel %vm42_vm0, %v100_v9, 0.0 }
  0x8d   :  { %50 = vadd.xlane.f32.xlu0 %v49_v10 }
  0xf9   :  { %v60_v16 = vpop.xlane.xlu1 %59 }
 0x100   :  { %v51_v11 = vpop.xlane.xlu0 %50 }
 0x101   :  { %101 = vlog2.f32 %v51_v11 }
 0x107   :  { %v102_v13 = vpop.eup %101 }
 0x108   :  { %v53_v14 = vmul.f32 0.6931472, %v102_v13 }
 0x10a   :  { %v61_v15 = vmul.f32 %v56_v12, %v53_v14 }
 0x10c   :  { %v62_v17 = vsub.f32 %v61_v15, %v60_v16 }
 0x10e   :  { %v64_v18 = vsel %vm63_vm1, %v62_v17, 0.0 }
 0x10f   :  { %65 = vadd.xlane.f32.xlu2 %v64_v18 }
 0x182   :  { %v66_v19 = vpop.xlane.xlu2 %65 }
 0x183   :  { %v67_v20 = vrot.slane %v66_v19, 4 }
 0x185   :  { %v68_v21 = vadd.f32 %v67_v20, %v66_v19 }
 0x187   :  { %v69_v22 = vrot.slane %v68_v21, 2 }
 0x189   :  { %v70_v23 = vadd.f32 %v69_v22, %v68_v21 }
 0x18b   :  { %v71_v24 = vrot.slane %v70_v23, 1 }
 0x18d   :  { %v72_v25 = vadd.f32 %v71_v24, %v70_v23 }
 0x18f   :  { %94 = vpush %v72_v25 }
 0x1c0   :  { %s95_s22 = spop %94 }
 0x1c1   :  { %v74_v26 = vstv %s95_s22 }
 0x1c2   :  { %75 = vst [vmem:[#allocation7] sm:$0xff] %v74_v26 }
 0x1c3   :  { %86 = dma.vmem_to_hbm [thread:$0]  %s82_s1, 128, %s84_s21, [#allocation4]  }
 0x1c4   :  { %179 = dma.done.wait [#allocation4], 128  }
 0x1c5   :  { %180 = vsyncadd [#allocation4], 4294967168 }
 0x1c6   :  { %91 = vsyncpa [#allocation3], 1 }
 0x1c7   :  { %92 = vsyncpa [#allocation6], 1 }
 0x1c8   :  { %93 = vsyncpa [#allocation4], 1 }

</bundles_post_ra>
